<compile_context>
chip_gen: v7x
topology: tpu7x:2x2x1
jax: 0.10.0
libtpu: 0.0.40
codegen_flags: <defaults>
</compile_context>

<pallas_src>
import functools

import jax
import jax.numpy as jnp
from jax.experimental import pallas as pl
from jax.experimental.pallas import tpu as pltpu

INPUT_SIZE = 224.0   # yoloLoss.inputSize
GRID_SIZE = 32.0     # yoloLoss.gridSize
TM_MAX = 8192        # max cells (lanes) per tile
NC = 2               # leading "parallel" grid axis (maps to 2 TCs on v7x)


def _make_kernel(tm, n_tiles, tiles_per_core, m_total):
    def kernel(p_ref, t_ref, out_ref):
        """p_ref/t_ref: (30, tm) feature-major tiles (lane axis = cells).

        out_ref: (8, tm) per-core, per-lane partial-sum accumulator, resident
        across the inner ("arbitrary") grid axis.
        rows: 0=loc, 1=contain, 2=not_contain, 3=noobj, 4=class, 5=objCnt.
        """
        @pl.when(pl.program_id(1) == 0)
        def _():
            out_ref[...] = jnp.zeros_like(out_ref)

        c = pl.program_id(0)
        i = pl.program_id(1)
        tile_id = c * tiles_per_core + i          # un-clamped logical tile

        p = p_ref[...]            # (30, tm) f32
        t = t_ref[...]            # (30, tm) f32

        # validity mask: kills (a) the ragged tail of the last tile and
        # (b) whole tiles past the end (a core's clamped duplicate tiles).
        lane = jax.lax.broadcasted_iota(jnp.int32, (1, tm), 1)
        cell = tile_id * tm + lane
        valid = jnp.logical_and(tile_id < n_tiles, cell < m_total)

        tc = t[4:5, :]                                  # target conf of box 0
        is_coo = jnp.logical_and(tc > 0.0, valid)       # object cells
        is_noo = jnp.logical_and(tc == 0.0, valid)      # torch noo_mask

        # ---- no-object confidence loss (pred cols 4 and 9 vs target) -------
        noo = jnp.where(is_noo,
                        (p[4:5] - t[4:5]) ** 2 + (p[9:10] - t[9:10]) ** 2,
                        0.0)

        # ---- class loss (features 10..29) -----------------------------------
        cls_sq = (p[10:30] - t[10:30]) ** 2                       # (20, tm)
        cls = jnp.where(is_coo, jnp.sum(cls_sq, axis=0, keepdims=True), 0.0)

        # ---- IoU between the 2 predicted boxes and the (first) target box ---
        def to_xyxy(b):  # b: rows [x, y, w, h, ...]
            cx = b[0:1] * GRID_SIZE
            cy = b[1:2] * GRID_SIZE
            hw = 0.5 * b[2:3] * INPUT_SIZE
            hh = 0.5 * b[3:4] * INPUT_SIZE
            return cx - hw, cy - hh, cx + hw, cy + hh

        pb0 = to_xyxy(p[0:5])
        pb1 = to_xyxy(p[5:10])
        tb = to_xyxy(t[0:5])

        def iou(a, b):
            lx = jnp.maximum(a[0], b[0])
            ly = jnp.maximum(a[1], b[1])
            rx = jnp.minimum(a[2], b[2])
            ry = jnp.minimum(a[3], b[3])
            w = jnp.maximum(rx - lx, 0.0)
            h = jnp.maximum(ry - ly, 0.0)
            inter = w * h
            a1 = (a[2] - a[0]) * (a[3] - a[1])
            a2 = (b[2] - b[0]) * (b[3] - b[1])
            denom = jnp.where(is_coo, a1 + a2 - inter, 1.0)   # NaN guard
            return inter / denom

        iou0 = iou(pb0, tb)
        iou1 = iou(pb1, tb)
        resp1 = iou1 > iou0                   # box 1 responsible (ties -> 0)
        max_iou = jnp.where(resp1, iou1, iou0)

        # responsible predicted box / SAME box slot of the target tensor
        # (matches torch: box_target[i + max_index])
        rpx = jnp.where(resp1, p[5:6], p[0:1])
        rpy = jnp.where(resp1, p[6:7], p[1:2])
        rpw = jnp.where(resp1, p[7:8], p[2:3])
        rph = jnp.where(resp1, p[8:9], p[3:4])
        rpc = jnp.where(resp1, p[9:10], p[4:5])
        npc = jnp.where(resp1, p[4:5], p[9:10])   # not-responsible pred conf
        rtx = jnp.where(resp1, t[5:6], t[0:1])
        rty = jnp.where(resp1, t[6:7], t[1:2])
        rtw = jnp.where(resp1, t[7:8], t[2:3])
        rth = jnp.where(resp1, t[8:9], t[3:4])

        contain = jnp.where(is_coo, (rpc - max_iou) ** 2, 0.0)
        not_contain = jnp.where(is_coo, npc ** 2, 0.0)

        def safe_sqrt(x):        # keep sqrt well-defined on masked-out lanes
            return jnp.sqrt(jnp.where(is_coo, x, 1.0))

        loc = jnp.where(is_coo,
                        (rpx - rtx) ** 2 + (rpy - rty) ** 2
                        + (safe_sqrt(rpw) - safe_sqrt(rtw)) ** 2
                        + (safe_sqrt(rph) - safe_sqrt(rth)) ** 2,
                        0.0)

        cnt = is_coo.astype(jnp.float32)

        # ---- deferred reduction: per-lane partial sums, pure VPU adds -------
        row = jax.lax.broadcasted_iota(jnp.int32, (8, tm), 0)
        vals = (jnp.where(row == 0, loc, 0.0)
                + jnp.where(row == 1, contain, 0.0)
                + jnp.where(row == 2, not_contain, 0.0)
                + jnp.where(row == 3, noo, 0.0)
                + jnp.where(row == 4, cls, 0.0)
                + jnp.where(row == 5, cnt, 0.0))
        out_ref[...] += vals

    return kernel


@functools.partial(jax.jit, static_argnames=("S", "B", "tm_max"))
def yolo_loss(pred_tensor, target_tensor, S, B, tm_max=TM_MAX):
    """pred_tensor/target_tensor: (N, S, S, B*5 + 20 = 30) float32."""
    del B  # fixed at 2 boxes (30-feature layout), as in the torch module
    N = pred_tensor.shape[0]
    M = N * S * S

    # Feature-major (30, M) so the cells ride the 128-wide lane axis.
    # TODO(synk): fold this single XLA transpose into the kernel once a
    # padded in-kernel (tm,30)->(30,tm) transpose is safe on all targets.
    p = jnp.transpose(pred_tensor.reshape(M, 30)).astype(jnp.float32)
    t = jnp.transpose(target_tensor.reshape(M, 30)).astype(jnp.float32)

    # Tile as wide as possible: one full-width block for small M (always a
    # legal block shape), otherwise tm_max lanes with a ragged (masked) tail.
    if M <= tm_max:
        tm = M
    else:
        assert tm_max % 128 == 0
        tm = tm_max
    n_tiles = (M + tm - 1) // tm
    tiles_per_core = (n_tiles + NC - 1) // NC

    kernel = _make_kernel(tm, n_tiles, tiles_per_core, M)

    def in_map(c, i):
        # Clamp so a core's trailing (empty) tiles never issue an
        # out-of-bounds DMA; their contribution is masked to 0 in-kernel.
        return (0, jnp.minimum(c * tiles_per_core + i, n_tiles - 1))

    acc = pl.pallas_call(
        kernel,
        out_shape=jax.ShapeDtypeStruct((NC * 8, tm), jnp.float32),
        grid_spec=pltpu.PrefetchScalarGridSpec(
            num_scalar_prefetch=0,
            grid=(NC, tiles_per_core),
            in_specs=[pl.BlockSpec((30, tm), in_map),
                      pl.BlockSpec((30, tm), in_map)],
            out_specs=pl.BlockSpec((8, tm), lambda c, i: (c, 0)),
        ),
        compiler_params=pltpu.CompilerParams(
            dimension_semantics=("parallel", "arbitrary")),
        cost_estimate=pl.CostEstimate(
            flops=220 * M,
            transcendentals=8 * M,
            bytes_accessed=2 * M * 30 * 4 + NC * 8 * tm * 4),
    )(p, t)

    # Tiny epilogue: fold per-core, per-lane partials and normalize.
    totals = jnp.sum(acc.reshape(NC, 8, tm), axis=(0, 2))
    loc_s, contain_s, ncont_s, noo_s, cls_s, obj_cnt = (
        totals[0], totals[1], totals[2], totals[3], totals[4], totals[5])
    # torch: noobjCnt = numel(coo_mask == False); guard the all-object corner
    # case (torch would produce inf there).
    noobj_cnt = jnp.maximum(jnp.float32(M) - obj_cnt, 1.0)

    Nf = jnp.float32(N)
    loc_loss = loc_s / Nf
    contain_loss = contain_s / Nf
    not_contain_loss = ncont_s / Nf
    nooobj_loss = noo_s / Nf * obj_cnt / noobj_cnt
    class_loss = cls_s / Nf
    total_loss = (loc_loss + contain_loss + not_contain_loss
                  + nooobj_loss + class_loss)
    return (total_loss, loc_loss, contain_loss, not_contain_loss,
            nooobj_loss, class_loss)


def yolo_loss_ref(pred, target, S):
    """Pure-JAX reference mirroring the torch forward semantics."""
    N = pred.shape[0]
    M = N * S * S
    p = pred.reshape(M, 30).astype(jnp.float32)
    t = target.reshape(M, 30).astype(jnp.float32)
    tc = t[:, 4]
    is_coo = tc > 0.0
    is_noo = tc == 0.0
    obj = jnp.sum(is_coo.astype(jnp.float32))
    noobj = jnp.maximum(jnp.float32(M) - obj, 1.0)

    noo = jnp.where(is_noo,
                    (p[:, 4] - t[:, 4]) ** 2 + (p[:, 9] - t[:, 9]) ** 2, 0.0)
    cls = jnp.where(is_coo,
                    jnp.sum((p[:, 10:] - t[:, 10:]) ** 2, axis=-1), 0.0)

    def xyxy(b):
        cx = b[..., 0] * GRID_SIZE
        cy = b[..., 1] * GRID_SIZE
        hw = 0.5 * b[..., 2] * INPUT_SIZE
        hh = 0.5 * b[..., 3] * INPUT_SIZE
        return jnp.stack([cx - hw, cy - hh, cx + hw, cy + hh], axis=-1)

    pb0, pb1, tb = xyxy(p[:, 0:4]), xyxy(p[:, 5:9]), xyxy(t[:, 0:4])

    def iou(a, b):
        lt = jnp.maximum(a[..., :2], b[..., :2])
        rb = jnp.minimum(a[..., 2:], b[..., 2:])
        wh = jnp.maximum(rb - lt, 0.0)
        inter = wh[..., 0] * wh[..., 1]
        a1 = (a[..., 2] - a[..., 0]) * (a[..., 3] - a[..., 1])
        a2 = (b[..., 2] - b[..., 0]) * (b[..., 3] - b[..., 1])
        denom = jnp.where(is_coo, a1 + a2 - inter, 1.0)
        return inter / denom

    i0, i1 = iou(pb0, tb), iou(pb1, tb)
    resp1 = i1 > i0
    max_iou = jnp.where(resp1, i1, i0)
    rp = jnp.where(resp1[:, None], p[:, 5:10], p[:, 0:5])
    rt = jnp.where(resp1[:, None], t[:, 5:10], t[:, 0:5])
    npc = jnp.where(resp1, p[:, 4], p[:, 9])
    contain = jnp.where(is_coo, (rp[:, 4] - max_iou) ** 2, 0.0)
    ncont = jnp.where(is_coo, npc ** 2, 0.0)
    sq = lambda x: jnp.sqrt(jnp.where(is_coo, x, 1.0))
    loc = jnp.where(is_coo,
                    (rp[:, 0] - rt[:, 0]) ** 2 + (rp[:, 1] - rt[:, 1]) ** 2
                    + (sq(rp[:, 2]) - sq(rt[:, 2])) ** 2
                    + (sq(rp[:, 3]) - sq(rt[:, 3])) ** 2, 0.0)

    Nf = jnp.float32(N)
    loc_l = jnp.sum(loc) / Nf
    con_l = jnp.sum(contain) / Nf
    nc_l = jnp.sum(ncont) / Nf
    noo_l = jnp.sum(noo) / Nf * obj / noobj
    cls_l = jnp.sum(cls) / Nf
    total = loc_l + con_l + nc_l + noo_l + cls_l
    return (total, loc_l, con_l, nc_l, noo_l, cls_l)


if __name__ == "__main__":
    def run_case(N, S, tm_max):
        key = jax.random.PRNGKey(0)
        k1, k2, k3 = jax.random.split(key, 3)
        # predictions positive so sqrt(w), sqrt(h) are defined (as in YOLO)
        pred = jax.random.uniform(k1, (N, S, S, 30), jnp.float32,
                                  minval=0.05, maxval=0.95)
        target = jax.random.uniform(k2, (N, S, S, 30), jnp.float32,
                                    minval=0.1, maxval=0.9)
        obj = (jax.random.uniform(k3, (N, S, S)) > 0.5).astype(jnp.float32)
        target = target.at[..., 4].set(obj).at[..., 9].set(obj)

        out = jax.block_until_ready(
            yolo_loss(pred, target, S=S, B=2, tm_max=tm_max))
        ref = jax.block_until_ready(yolo_loss_ref(pred, target, S))
        names = ("total", "loc", "contain", "not_contain", "noobj", "class")
        for name, o, r in zip(names, out, ref):
            assert jnp.isfinite(o), f"non-finite {name} loss"
            assert jnp.allclose(o, r, rtol=1e-4, atol=1e-4), (
                f"{name} mismatch: pallas={o}, ref={r}")

    # single full-width tile path (M = 2*7*7 = 98 cells)
    run_case(N=2, S=7, tm_max=8192)
    # multi-tile path: ragged last tile + per-core split + clamped tail tile
    run_case(N=6, S=7, tm_max=128)
    print("KERNEL_OK")
</pallas_src>

<mosaic_0001>
module attributes {stable_mosaic.version = 11 : i64} {
  func.func @kernel(%arg0: i32, %arg1: i32, %arg2: memref<30x98xf32, #tpu.memory_space<vmem>>, %arg3: memref<30x98xf32, #tpu.memory_space<vmem>>, %arg4: memref<8x98xf32, #tpu.memory_space<vmem>>) attributes {dimension_semantics = [#tpu.dimension_semantics<parallel>, #tpu.dimension_semantics<arbitrary>], iteration_bounds = array<i64: 2, 1>, scalar_prefetch = 0 : i64, scratch_operands = 0 : i64, tpu.core_type = #tpu.core_type<tc>, window_params = [{transform_indices = @transform_0, window_bounds = array<i64: 30, 98>}, {transform_indices = @transform_1, window_bounds = array<i64: 30, 98>}, {transform_indices = @transform_2, window_bounds = array<i64: 8, 98>}]} {
    %c0_i32 = arith.constant 0 : i32
    %0 = arith.cmpi eq, %arg1, %c0_i32 : i32
    %1 = arith.extui %0 : i1 to i32
    %c0_i32_0 = arith.constant 0 : i32
    %2 = arith.cmpi ne, %1, %c0_i32_0 : i32
    scf.if %2 {
      %cst_53 = arith.constant 0.000000e+00 : f32
      %260 = vector.broadcast %cst_53 : f32 to vector<8x98xf32>
      %c0_54 = arith.constant 0 : index
      %c0_55 = arith.constant 0 : index
      %261 = vector.load %arg4[%c0_54, %c0_55] : memref<8x98xf32, #tpu.memory_space<vmem>>, vector<8x98xf32>
      tpu.vector_store %arg4[%c0_54, %c0_55], %260 {strides = array<i32>} : memref<8x98xf32, #tpu.memory_space<vmem>>, vector<8x98xf32>,
    } else {
    }
    %c1_i32 = arith.constant 1 : i32
    %3 = arith.muli %arg0, %c1_i32 : i32
    %4 = arith.addi %3, %arg1 : i32
    %c0 = arith.constant 0 : index
    %c0_1 = arith.constant 0 : index
    %5 = vector.load %arg2[%c0, %c0_1] : memref<30x98xf32, #tpu.memory_space<vmem>>, vector<30x98xf32>
    %c0_2 = arith.constant 0 : index
    %c0_3 = arith.constant 0 : index
    %6 = vector.load %arg3[%c0_2, %c0_3] : memref<30x98xf32, #tpu.memory_space<vmem>>, vector<30x98xf32>
    %7 = tpu.iota {dimensions = array<i32: 1>} : vector<1x98xi32>
    %c98_i32 = arith.constant 98 : i32
    %8 = arith.muli %4, %c98_i32 : i32
    %9 = vector.broadcast %8 : i32 to vector<1x98xi32>
    %10 = arith.addi %9, %7 : vector<1x98xi32>
    %c1_i32_4 = arith.constant 1 : i32
    %11 = arith.cmpi slt, %4, %c1_i32_4 : i32
    %c98_i32_5 = arith.constant 98 : i32
    %12 = vector.broadcast %c98_i32_5 : i32 to vector<1x98xi32>
    %13 = arith.cmpi slt, %10, %12 : vector<1x98xi32>
    %14 = vector.broadcast %11 : i1 to vector<1x98xi1>
    %15 = arith.andi %14, %13 : vector<1x98xi1>
    %16 = vector.extract_strided_slice %6 {offsets = [4, 0], sizes = [1, 98], strides = [1, 1]} : vector<30x98xf32> to vector<1x98xf32>
    %cst = arith.constant 0.000000e+00 : f32
    %17 = vector.broadcast %cst : f32 to vector<1x98xf32>
    %18 = arith.cmpf ogt, %16, %17 : vector<1x98xf32>
    %19 = arith.andi %18, %15 : vector<1x98xi1>
    %cst_6 = arith.constant 0.000000e+00 : f32
    %20 = vector.broadcast %cst_6 : f32 to vector<1x98xf32>
    %21 = arith.cmpf oeq, %16, %20 : vector<1x98xf32>
    %22 = arith.andi %21, %15 : vector<1x98xi1>
    %23 = vector.extract_strided_slice %5 {offsets = [4, 0], sizes = [1, 98], strides = [1, 1]} : vector<30x98xf32> to vector<1x98xf32>
    %24 = vector.extract_strided_slice %6 {offsets = [4, 0], sizes = [1, 98], strides = [1, 1]} : vector<30x98xf32> to vector<1x98xf32>
    %25 = arith.subf %23, %24 : vector<1x98xf32>
    %26 = arith.mulf %25, %25 : vector<1x98xf32>
    %27 = vector.extract_strided_slice %5 {offsets = [9, 0], sizes = [1, 98], strides = [1, 1]} : vector<30x98xf32> to vector<1x98xf32>
    %28 = vector.extract_strided_slice %6 {offsets = [9, 0], sizes = [1, 98], strides = [1, 1]} : vector<30x98xf32> to vector<1x98xf32>
    %29 = arith.subf %27, %28 : vector<1x98xf32>
    %30 = arith.mulf %29, %29 : vector<1x98xf32>
    %31 = arith.addf %26, %30 : vector<1x98xf32>
    %cst_7 = arith.constant 0.000000e+00 : f32
    %32 = vector.broadcast %cst_7 : f32 to vector<1x98xf32>
    %33 = arith.select %22, %31, %32 : vector<1x98xi1>, vector<1x98xf32>
    %34 = vector.extract_strided_slice %5 {offsets = [10, 0], sizes = [20, 98], strides = [1, 1]} : vector<30x98xf32> to vector<20x98xf32>
    %35 = vector.extract_strided_slice %6 {offsets = [10, 0], sizes = [20, 98], strides = [1, 1]} : vector<30x98xf32> to vector<20x98xf32>
    %36 = arith.subf %34, %35 : vector<20x98xf32>
    %37 = arith.mulf %36, %36 : vector<20x98xf32>
    %cst_8 = arith.constant dense<0.000000e+00> : vector<98xf32>
    %38 = vector.multi_reduction <add>, %37, %cst_8 [0] : vector<20x98xf32> to vector<98xf32>
    %39 = vector.shape_cast %38 : vector<98xf32> to vector<1x98xf32>
    %cst_9 = arith.constant 0.000000e+00 : f32
    %40 = vector.broadcast %cst_9 : f32 to vector<1x98xf32>
    %41 = arith.select %19, %39, %40 : vector<1x98xi1>, vector<1x98xf32>
    %42 = vector.extract_strided_slice %5 {offsets = [0, 0], sizes = [5, 98], strides = [1, 1]} : vector<30x98xf32> to vector<5x98xf32>
    %43 = vector.extract_strided_slice %42 {offsets = [0, 0], sizes = [1, 98], strides = [1, 1]} : vector<5x98xf32> to vector<1x98xf32>
    %cst_10 = arith.constant 3.200000e+01 : f32
    %44 = vector.broadcast %cst_10 : f32 to vector<1x98xf32>
    %45 = arith.mulf %43, %44 : vector<1x98xf32>
    %46 = vector.extract_strided_slice %42 {offsets = [1, 0], sizes = [1, 98], strides = [1, 1]} : vector<5x98xf32> to vector<1x98xf32>
    %cst_11 = arith.constant 3.200000e+01 : f32
    %47 = vector.broadcast %cst_11 : f32 to vector<1x98xf32>
    %48 = arith.mulf %46, %47 : vector<1x98xf32>
    %49 = vector.extract_strided_slice %42 {offsets = [2, 0], sizes = [1, 98], strides = [1, 1]} : vector<5x98xf32> to vector<1x98xf32>
    %cst_12 = arith.constant 5.000000e-01 : f32
    %50 = vector.broadcast %cst_12 : f32 to vector<1x98xf32>
    %51 = arith.mulf %50, %49 : vector<1x98xf32>
    %cst_13 = arith.constant 2.240000e+02 : f32
    %52 = vector.broadcast %cst_13 : f32 to vector<1x98xf32>
    %53 = arith.mulf %51, %52 : vector<1x98xf32>
    %54 = vector.extract_strided_slice %42 {offsets = [3, 0], sizes = [1, 98], strides = [1, 1]} : vector<5x98xf32> to vector<1x98xf32>
    %cst_14 = arith.constant 5.000000e-01 : f32
    %55 = vector.broadcast %cst_14 : f32 to vector<1x98xf32>
    %56 = arith.mulf %55, %54 : vector<1x98xf32>
    %cst_15 = arith.constant 2.240000e+02 : f32
    %57 = vector.broadcast %cst_15 : f32 to vector<1x98xf32>
    %58 = arith.mulf %56, %57 : vector<1x98xf32>
    %59 = arith.subf %45, %53 : vector<1x98xf32>
    %60 = arith.subf %48, %58 : vector<1x98xf32>
    %61 = arith.addf %45, %53 : vector<1x98xf32>
    %62 = arith.addf %48, %58 : vector<1x98xf32>
    %63 = vector.extract_strided_slice %5 {offsets = [5, 0], sizes = [5, 98], strides = [1, 1]} : vector<30x98xf32> to vector<5x98xf32>
    %64 = vector.extract_strided_slice %63 {offsets = [0, 0], sizes = [1, 98], strides = [1, 1]} : vector<5x98xf32> to vector<1x98xf32>
    %cst_16 = arith.constant 3.200000e+01 : f32
    %65 = vector.broadcast %cst_16 : f32 to vector<1x98xf32>
    %66 = arith.mulf %64, %65 : vector<1x98xf32>
    %67 = vector.extract_strided_slice %63 {offsets = [1, 0], sizes = [1, 98], strides = [1, 1]} : vector<5x98xf32> to vector<1x98xf32>
    %cst_17 = arith.constant 3.200000e+01 : f32
    %68 = vector.broadcast %cst_17 : f32 to vector<1x98xf32>
    %69 = arith.mulf %67, %68 : vector<1x98xf32>
    %70 = vector.extract_strided_slice %63 {offsets = [2, 0], sizes = [1, 98], strides = [1, 1]} : vector<5x98xf32> to vector<1x98xf32>
    %cst_18 = arith.constant 5.000000e-01 : f32
    %71 = vector.broadcast %cst_18 : f32 to vector<1x98xf32>
    %72 = arith.mulf %71, %70 : vector<1x98xf32>
    %cst_19 = arith.constant 2.240000e+02 : f32
    %73 = vector.broadcast %cst_19 : f32 to vector<1x98xf32>
    %74 = arith.mulf %72, %73 : vector<1x98xf32>
    %75 = vector.extract_strided_slice %63 {offsets = [3, 0], sizes = [1, 98], strides = [1, 1]} : vector<5x98xf32> to vector<1x98xf32>
    %cst_20 = arith.constant 5.000000e-01 : f32
    %76 = vector.broadcast %cst_20 : f32 to vector<1x98xf32>
    %77 = arith.mulf %76, %75 : vector<1x98xf32>
    %cst_21 = arith.constant 2.240000e+02 : f32
    %78 = vector.broadcast %cst_21 : f32 to vector<1x98xf32>
    %79 = arith.mulf %77, %78 : vector<1x98xf32>
    %80 = arith.subf %66, %74 : vector<1x98xf32>
    %81 = arith.subf %69, %79 : vector<1x98xf32>
    %82 = arith.addf %66, %74 : vector<1x98xf32>
    %83 = arith.addf %69, %79 : vector<1x98xf32>
    %84 = vector.extract_strided_slice %6 {offsets = [0, 0], sizes = [5, 98], strides = [1, 1]} : vector<30x98xf32> to vector<5x98xf32>
    %85 = vector.extract_strided_slice %84 {offsets = [0, 0], sizes = [1, 98], strides = [1, 1]} : vector<5x98xf32> to vector<1x98xf32>
    %cst_22 = arith.constant 3.200000e+01 : f32
    %86 = vector.broadcast %cst_22 : f32 to vector<1x98xf32>
    %87 = arith.mulf %85, %86 : vector<1x98xf32>
    %88 = vector.extract_strided_slice %84 {offsets = [1, 0], sizes = [1, 98], strides = [1, 1]} : vector<5x98xf32> to vector<1x98xf32>
    %cst_23 = arith.constant 3.200000e+01 : f32
    %89 = vector.broadcast %cst_23 : f32 to vector<1x98xf32>
    %90 = arith.mulf %88, %89 : vector<1x98xf32>
    %91 = vector.extract_strided_slice %84 {offsets = [2, 0], sizes = [1, 98], strides = [1, 1]} : vector<5x98xf32> to vector<1x98xf32>
    %cst_24 = arith.constant 5.000000e-01 : f32
    %92 = vector.broadcast %cst_24 : f32 to vector<1x98xf32>
    %93 = arith.mulf %92, %91 : vector<1x98xf32>
    %cst_25 = arith.constant 2.240000e+02 : f32
    %94 = vector.broadcast %cst_25 : f32 to vector<1x98xf32>
    %95 = arith.mulf %93, %94 : vector<1x98xf32>
    %96 = vector.extract_strided_slice %84 {offsets = [3, 0], sizes = [1, 98], strides = [1, 1]} : vector<5x98xf32> to vector<1x98xf32>
    %cst_26 = arith.constant 5.000000e-01 : f32
    %97 = vector.broadcast %cst_26 : f32 to vector<1x98xf32>
    %98 = arith.mulf %97, %96 : vector<1x98xf32>
    %cst_27 = arith.constant 2.240000e+02 : f32
    %99 = vector.broadcast %cst_27 : f32 to vector<1x98xf32>
    %100 = arith.mulf %98, %99 : vector<1x98xf32>
    %101 = arith.subf %87, %95 : vector<1x98xf32>
    %102 = arith.subf %90, %100 : vector<1x98xf32>
    %103 = arith.addf %87, %95 : vector<1x98xf32>
    %104 = arith.addf %90, %100 : vector<1x98xf32>
    %105 = arith.maximumf %59, %101 : vector<1x98xf32>
    %106 = arith.maximumf %60, %102 : vector<1x98xf32>
    %107 = arith.minimumf %61, %103 : vector<1x98xf32>
    %108 = arith.minimumf %62, %104 : vector<1x98xf32>
    %109 = arith.subf %107, %105 : vector<1x98xf32>
    %cst_28 = arith.constant 0.000000e+00 : f32
    %110 = vector.broadcast %cst_28 : f32 to vector<1x98xf32>
    %111 = arith.maximumf %109, %110 : vector<1x98xf32>
    %112 = arith.subf %108, %106 : vector<1x98xf32>
    %cst_29 = arith.constant 0.000000e+00 : f32
    %113 = vector.broadcast %cst_29 : f32 to vector<1x98xf32>
    %114 = arith.maximumf %112, %113 : vector<1x98xf32>
    %115 = arith.mulf %111, %114 : vector<1x98xf32>
    %116 = arith.subf %61, %59 : vector<1x98xf32>
    %117 = arith.subf %62, %60 : vector<1x98xf32>
    %118 = arith.mulf %116, %117 : vector<1x98xf32>
    %119 = arith.subf %103, %101 : vector<1x98xf32>
    %120 = arith.subf %104, %102 : vector<1x98xf32>
    %121 = arith.mulf %119, %120 : vector<1x98xf32>
    %122 = arith.addf %118, %121 : vector<1x98xf32>
    %123 = arith.subf %122, %115 : vector<1x98xf32>
    %cst_30 = arith.constant 1.000000e+00 : f32
    %124 = vector.broadcast %cst_30 : f32 to vector<1x98xf32>
    %125 = arith.select %19, %123, %124 : vector<1x98xi1>, vector<1x98xf32>
    %126 = arith.divf %115, %125 : vector<1x98xf32>
    %127 = arith.maximumf %80, %101 : vector<1x98xf32>
    %128 = arith.maximumf %81, %102 : vector<1x98xf32>
    %129 = arith.minimumf %82, %103 : vector<1x98xf32>
    %130 = arith.minimumf %83, %104 : vector<1x98xf32>
    %131 = arith.subf %129, %127 : vector<1x98xf32>
    %cst_31 = arith.constant 0.000000e+00 : f32
    %132 = vector.broadcast %cst_31 : f32 to vector<1x98xf32>
    %133 = arith.maximumf %131, %132 : vector<1x98xf32>
    %134 = arith.subf %130, %128 : vector<1x98xf32>
    %cst_32 = arith.constant 0.000000e+00 : f32
    %135 = vector.broadcast %cst_32 : f32 to vector<1x98xf32>
    %136 = arith.maximumf %134, %135 : vector<1x98xf32>
    %137 = arith.mulf %133, %136 : vector<1x98xf32>
    %138 = arith.subf %82, %80 : vector<1x98xf32>
    %139 = arith.subf %83, %81 : vector<1x98xf32>
    %140 = arith.mulf %138, %139 : vector<1x98xf32>
    %141 = arith.subf %103, %101 : vector<1x98xf32>
    %142 = arith.subf %104, %102 : vector<1x98xf32>
    %143 = arith.mulf %141, %142 : vector<1x98xf32>
    %144 = arith.addf %140, %143 : vector<1x98xf32>
    %145 = arith.subf %144, %137 : vector<1x98xf32>
    %cst_33 = arith.constant 1.000000e+00 : f32
    %146 = vector.broadcast %cst_33 : f32 to vector<1x98xf32>
    %147 = arith.select %19, %145, %146 : vector<1x98xi1>, vector<1x98xf32>
    %148 = arith.divf %137, %147 : vector<1x98xf32>
    %149 = arith.cmpf ogt, %148, %126 : vector<1x98xf32>
    %150 = arith.select %149, %148, %126 : vector<1x98xi1>, vector<1x98xf32>
    %151 = vector.extract_strided_slice %5 {offsets = [5, 0], sizes = [1, 98], strides = [1, 1]} : vector<30x98xf32> to vector<1x98xf32>
    %152 = vector.extract_strided_slice %5 {offsets = [0, 0], sizes = [1, 98], strides = [1, 1]} : vector<30x98xf32> to vector<1x98xf32>
    %153 = arith.select %149, %151, %152 : vector<1x98xi1>, vector<1x98xf32>
    %154 = vector.extract_strided_slice %5 {offsets = [6, 0], sizes = [1, 98], strides = [1, 1]} : vector<30x98xf32> to vector<1x98xf32>
    %155 = vector.extract_strided_slice %5 {offsets = [1, 0], sizes = [1, 98], strides = [1, 1]} : vector<30x98xf32> to vector<1x98xf32>
    %156 = arith.select %149, %154, %155 : vector<1x98xi1>, vector<1x98xf32>
    %157 = vector.extract_strided_slice %5 {offsets = [7, 0], sizes = [1, 98], strides = [1, 1]} : vector<30x98xf32> to vector<1x98xf32>
    %158 = vector.extract_strided_slice %5 {offsets = [2, 0], sizes = [1, 98], strides = [1, 1]} : vector<30x98xf32> to vector<1x98xf32>
    %159 = arith.select %149, %157, %158 : vector<1x98xi1>, vector<1x98xf32>
    %160 = vector.extract_strided_slice %5 {offsets = [8, 0], sizes = [1, 98], strides = [1, 1]} : vector<30x98xf32> to vector<1x98xf32>
    %161 = vector.extract_strided_slice %5 {offsets = [3, 0], sizes = [1, 98], strides = [1, 1]} : vector<30x98xf32> to vector<1x98xf32>
    %162 = arith.select %149, %160, %161 : vector<1x98xi1>, vector<1x98xf32>
    %163 = vector.extract_strided_slice %5 {offsets = [9, 0], sizes = [1, 98], strides = [1, 1]} : vector<30x98xf32> to vector<1x98xf32>
    %164 = vector.extract_strided_slice %5 {offsets = [4, 0], sizes = [1, 98], strides = [1, 1]} : vector<30x98xf32> to vector<1x98xf32>
    %165 = arith.select %149, %163, %164 : vector<1x98xi1>, vector<1x98xf32>
    %166 = vector.extract_strided_slice %5 {offsets = [4, 0], sizes = [1, 98], strides = [1, 1]} : vector<30x98xf32> to vector<1x98xf32>
    %167 = vector.extract_strided_slice %5 {offsets = [9, 0], sizes = [1, 98], strides = [1, 1]} : vector<30x98xf32> to vector<1x98xf32>
    %168 = arith.select %149, %166, %167 : vector<1x98xi1>, vector<1x98xf32>
    %169 = vector.extract_strided_slice %6 {offsets = [5, 0], sizes = [1, 98], strides = [1, 1]} : vector<30x98xf32> to vector<1x98xf32>
    %170 = vector.extract_strided_slice %6 {offsets = [0, 0], sizes = [1, 98], strides = [1, 1]} : vector<30x98xf32> to vector<1x98xf32>
    %171 = arith.select %149, %169, %170 : vector<1x98xi1>, vector<1x98xf32>
    %172 = vector.extract_strided_slice %6 {offsets = [6, 0], sizes = [1, 98], strides = [1, 1]} : vector<30x98xf32> to vector<1x98xf32>
    %173 = vector.extract_strided_slice %6 {offsets = [1, 0], sizes = [1, 98], strides = [1, 1]} : vector<30x98xf32> to vector<1x98xf32>
    %174 = arith.select %149, %172, %173 : vector<1x98xi1>, vector<1x98xf32>
    %175 = vector.extract_strided_slice %6 {offsets = [7, 0], sizes = [1, 98], strides = [1, 1]} : vector<30x98xf32> to vector<1x98xf32>
    %176 = vector.extract_strided_slice %6 {offsets = [2, 0], sizes = [1, 98], strides = [1, 1]} : vector<30x98xf32> to vector<1x98xf32>
    %177 = arith.select %149, %175, %176 : vector<1x98xi1>, vector<1x98xf32>
    %178 = vector.extract_strided_slice %6 {offsets = [8, 0], sizes = [1, 98], strides = [1, 1]} : vector<30x98xf32> to vector<1x98xf32>
    %179 = vector.extract_strided_slice %6 {offsets = [3, 0], sizes = [1, 98], strides = [1, 1]} : vector<30x98xf32> to vector<1x98xf32>
    %180 = arith.select %149, %178, %179 : vector<1x98xi1>, vector<1x98xf32>
    %181 = arith.subf %165, %150 : vector<1x98xf32>
    %182 = arith.mulf %181, %181 : vector<1x98xf32>
    %cst_34 = arith.constant 0.000000e+00 : f32
    %183 = vector.broadcast %cst_34 : f32 to vector<1x98xf32>
    %184 = arith.select %19, %182, %183 : vector<1x98xi1>, vector<1x98xf32>
    %185 = arith.mulf %168, %168 : vector<1x98xf32>
    %cst_35 = arith.constant 0.000000e+00 : f32
    %186 = vector.broadcast %cst_35 : f32 to vector<1x98xf32>
    %187 = arith.select %19, %185, %186 : vector<1x98xi1>, vector<1x98xf32>
    %188 = arith.subf %153, %171 : vector<1x98xf32>
    %189 = arith.mulf %188, %188 : vector<1x98xf32>
    %190 = arith.subf %156, %174 : vector<1x98xf32>
    %191 = arith.mulf %190, %190 : vector<1x98xf32>
    %192 = arith.addf %189, %191 : vector<1x98xf32>
    %cst_36 = arith.constant 1.000000e+00 : f32
    %193 = vector.broadcast %cst_36 : f32 to vector<1x98xf32>
    %194 = arith.select %19, %159, %193 : vector<1x98xi1>, vector<1x98xf32>
    %195 = math.sqrt %194 : vector<1x98xf32>
    %cst_37 = arith.constant 1.000000e+00 : f32
    %196 = vector.broadcast %cst_37 : f32 to vector<1x98xf32>
    %197 = arith.select %19, %177, %196 : vector<1x98xi1>, vector<1x98xf32>
    %198 = math.sqrt %197 : vector<1x98xf32>
    %199 = arith.subf %195, %198 : vector<1x98xf32>
    %200 = arith.mulf %199, %199 : vector<1x98xf32>
    %201 = arith.addf %192, %200 : vector<1x98xf32>
    %cst_38 = arith.constant 1.000000e+00 : f32
    %202 = vector.broadcast %cst_38 : f32 to vector<1x98xf32>
    %203 = arith.select %19, %162, %202 : vector<1x98xi1>, vector<1x98xf32>
    %204 = math.sqrt %203 : vector<1x98xf32>
    %cst_39 = arith.constant 1.000000e+00 : f32
    %205 = vector.broadcast %cst_39 : f32 to vector<1x98xf32>
    %206 = arith.select %19, %180, %205 : vector<1x98xi1>, vector<1x98xf32>
    %207 = math.sqrt %206 : vector<1x98xf32>
    %208 = arith.subf %204, %207 : vector<1x98xf32>
    %209 = arith.mulf %208, %208 : vector<1x98xf32>
    %210 = arith.addf %201, %209 : vector<1x98xf32>
    %cst_40 = arith.constant 0.000000e+00 : f32
    %211 = vector.broadcast %cst_40 : f32 to vector<1x98xf32>
    %212 = arith.select %19, %210, %211 : vector<1x98xi1>, vector<1x98xf32>
    %213 = arith.extui %19 : vector<1x98xi1> to vector<1x98xi32>
    %214 = arith.sitofp %213 : vector<1x98xi32> to vector<1x98xf32>
    %215 = tpu.iota {dimensions = array<i32: 0>} : vector<8x98xi32>
    %c0_i32_41 = arith.constant 0 : i32
    %216 = vector.broadcast %c0_i32_41 : i32 to vector<8x98xi32>
    %217 = arith.cmpi eq, %215, %216 : vector<8x98xi32>
    %cst_42 = arith.constant 0.000000e+00 : f32
    %218 = vector.shape_cast %212 : vector<1x98xf32> to vector<1x98xf32>
    %219 = vector.broadcast %218 : vector<1x98xf32> to vector<8x98xf32>
    %220 = vector.broadcast %cst_42 : f32 to vector<8x98xf32>
    %221 = arith.select %217, %219, %220 : vector<8x98xi1>, vector<8x98xf32>
    %c1_i32_43 = arith.constant 1 : i32
    %222 = vector.broadcast %c1_i32_43 : i32 to vector<8x98xi32>
    %223 = arith.cmpi eq, %215, %222 : vector<8x98xi32>
    %cst_44 = arith.constant 0.000000e+00 : f32
    %224 = vector.shape_cast %184 : vector<1x98xf32> to vector<1x98xf32>
    %225 = vector.broadcast %224 : vector<1x98xf32> to vector<8x98xf32>
    %226 = vector.broadcast %cst_44 : f32 to vector<8x98xf32>
    %227 = arith.select %223, %225, %226 : vector<8x98xi1>, vector<8x98xf32>
    %228 = arith.addf %221, %227 : vector<8x98xf32>
    %c2_i32 = arith.constant 2 : i32
    %229 = vector.broadcast %c2_i32 : i32 to vector<8x98xi32>
    %230 = arith.cmpi eq, %215, %229 : vector<8x98xi32>
    %cst_45 = arith.constant 0.000000e+00 : f32
    %231 = vector.shape_cast %187 : vector<1x98xf32> to vector<1x98xf32>
    %232 = vector.broadcast %231 : vector<1x98xf32> to vector<8x98xf32>
    %233 = vector.broadcast %cst_45 : f32 to vector<8x98xf32>
    %234 = arith.select %230, %232, %233 : vector<8x98xi1>, vector<8x98xf32>
    %235 = arith.addf %228, %234 : vector<8x98xf32>
    %c3_i32 = arith.constant 3 : i32
    %236 = vector.broadcast %c3_i32 : i32 to vector<8x98xi32>
    %237 = arith.cmpi eq, %215, %236 : vector<8x98xi32>
    %cst_46 = arith.constant 0.000000e+00 : f32
    %238 = vector.shape_cast %33 : vector<1x98xf32> to vector<1x98xf32>
    %239 = vector.broadcast %238 : vector<1x98xf32> to vector<8x98xf32>
    %240 = vector.broadcast %cst_46 : f32 to vector<8x98xf32>
    %241 = arith.select %237, %239, %240 : vector<8x98xi1>, vector<8x98xf32>
    %242 = arith.addf %235, %241 : vector<8x98xf32>
    %c4_i32 = arith.constant 4 : i32
    %243 = vector.broadcast %c4_i32 : i32 to vector<8x98xi32>
    %244 = arith.cmpi eq, %215, %243 : vector<8x98xi32>
    %cst_47 = arith.constant 0.000000e+00 : f32
    %245 = vector.shape_cast %41 : vector<1x98xf32> to vector<1x98xf32>
    %246 = vector.broadcast %245 : vector<1x98xf32> to vector<8x98xf32>
    %247 = vector.broadcast %cst_47 : f32 to vector<8x98xf32>
    %248 = arith.select %244, %246, %247 : vector<8x98xi1>, vector<8x98xf32>
    %249 = arith.addf %242, %248 : vector<8x98xf32>
    %c5_i32 = arith.constant 5 : i32
    %250 = vector.broadcast %c5_i32 : i32 to vector<8x98xi32>
    %251 = arith.cmpi eq, %215, %250 : vector<8x98xi32>
    %cst_48 = arith.constant 0.000000e+00 : f32
    %252 = vector.shape_cast %214 : vector<1x98xf32> to vector<1x98xf32>
    %253 = vector.broadcast %252 : vector<1x98xf32> to vector<8x98xf32>
    %254 = vector.broadcast %cst_48 : f32 to vector<8x98xf32>
    %255 = arith.select %251, %253, %254 : vector<8x98xi1>, vector<8x98xf32>
    %256 = arith.addf %249, %255 : vector<8x98xf32>
    %c0_49 = arith.constant 0 : index
    %c0_50 = arith.constant 0 : index
    %257 = vector.load %arg4[%c0_49, %c0_50] : memref<8x98xf32, #tpu.memory_space<vmem>>, vector<8x98xf32>
    %258 = arith.addf %257, %256 : vector<8x98xf32>
    %c0_51 = arith.constant 0 : index
    %c0_52 = arith.constant 0 : index
    %259 = vector.load %arg4[%c0_51, %c0_52] : memref<8x98xf32, #tpu.memory_space<vmem>>, vector<8x98xf32>
    tpu.vector_store %arg4[%c0_51, %c0_52], %258 {strides = array<i32>} : memref<8x98xf32, #tpu.memory_space<vmem>>, vector<8x98xf32>,
    return
  }
  func.func @transform_0(%arg0: i32, %arg1: i32) -> (i32, i32) {
    %c1_i32 = arith.constant 1 : i32
    %0 = arith.muli %arg0, %c1_i32 : i32
    %1 = arith.addi %0, %arg1 : i32
    %c0_i32 = arith.constant 0 : i32
    %2 = arith.minsi %1, %c0_i32 : i32
    %c0_i32_0 = arith.constant 0 : i32
    %c0_i32_1 = arith.constant 0 : i32
    return %c0_i32_0, %2 : i32, i32
  }
  func.func @transform_1(%arg0: i32, %arg1: i32) -> (i32, i32) {
    %c1_i32 = arith.constant 1 : i32
    %0 = arith.muli %arg0, %c1_i32 : i32
    %1 = arith.addi %0, %arg1 : i32
    %c0_i32 = arith.constant 0 : i32
    %2 = arith.minsi %1, %c0_i32 : i32
    %c0_i32_0 = arith.constant 0 : i32
    %c0_i32_1 = arith.constant 0 : i32
    return %c0_i32_0, %2 : i32, i32
  }
  func.func @transform_2(%arg0: i32, %arg1: i32) -> (i32, i32) {
    %c0_i32 = arith.constant 0 : i32
    %c0_i32_0 = arith.constant 0 : i32
    return %arg0, %c0_i32 : i32, i32
  }
}

</mosaic_0001>

<bundles_post_ra>
// kernel: yolo_loss.1
= control target key start
LH: loop header
LB: loop body
LE: loop exit
PB: predicated region body
PF: predicated region fallthrough
CT: control target
= control target key end

     0   :  { %s709_s9 = smov 0   ;;  %s711_s10 = smov 0   ;;  %s886_s0 = inlined_call_operand.vmem [shape: f32[30,98], index: 0, kind: input, shape index: {}]   ;;  %s887_s1 = inlined_call_operand.vmem [shape: f32[30,98], index: 1, kind: input, shape index: {}]   ;;  %s888_s2 = inlined_call_operand.vmem [shape: f32[16,98], index: 2, kind: output, shape index: {}]  }
   0x1   :  { %s713_s11 = smov 0  }
   0x2 LB: > { %s24_s12 = sadd.s32 1, %s687_s10  ;;  %p619_p0 = scmp.ge.s32.totalorder %s691_s11, 1  ;;  %s691_s11 = sphi %s713_s11, %s12_s11   ;;  %s687_s10 = sphi %s711_s10, %s898_s10   ;;  %s683_s9 = sphi %s709_s9, %s897_s9  }
   0x3   : > { %p26_p1 = scmp.ge.s32.totalorder %s24_s12, 2  ;;  %p156_p2 = scmp.lt.s32.totalorder %s691_s11, 3 }
   0x5   : > { %s900_s12 = smov (%p26_p1, %s24_s12), 0  ;;  %p157_p3 = pnand %p619_p0, %p156_p2 }
   0x6   : > { %p187_p4 = scmp.lt.s32.totalorder (!%p157_p3), %s683_s9, 0  ;;  %v225_v0 = vlaneseq (!%p157_p3)  ;;  %p206_p5 = scmp.lt.s32.totalorder (!%p157_p3), %s683_s9, 1  ;;  %vm214_vm0 = vcmask (!%p157_p3), 801792   ;;  %v693_v3 = vmov (!%p157_p3), 0.0   ;;  %vm255_vm8 = vcmask (!%p157_p3), 1045504  }
   0x7   : > { %160 = sbr.rel (%p157_p3) target bundleno = 113 (0x71), region = 28  ;;  %vm268_vm9 = vcmask (!%p157_p3), 797696  }
   0x8   : > { %s227_s13 = smul.u32 (!%p157_p3), 98, %s683_s9  ;;  %v226_v1 = vand.u32 (!%p157_p3), 127, %v225_v0 }
   0xa   : > { %v228_v2 = vstv (!%p157_p3), %s227_s13 }
   0xb   : > { %v229_v4 = vadd.s32 (!%p157_p3), %v228_v2, %v226_v1 }
   0xd   : > { %vm231_vm1 = vcmp.lt.s32.totalorder (!%p157_p3), %v229_v4, 98 }
   0xe   : > { %s188_s14 = scalar_select %p187_p4, %s683_s9, 0 }
   0xf   : > { %s207_s15 = scalar_select %p206_p5, %s683_s9, 1 }
  0x10   : > { %s902_s14 = smov (!%p187_p4, %s188_s14), 0 }
  0x11   : > { %s628_s16 = sshll.u32 %s207_s15, 3  ;;  %s623_s17 = sshll.u32 %s902_s14, 3 }
  0x12   : > { %s732_s20 = scalar_lea.vmem %s888_s2, %s628_s16  ;;  %s737_s23 = scalar_lea.vmem %s886_s0, %s623_s17 }
  0x13   : > { %s742_s26 = scalar_lea.vmem %s887_s1, %s623_s17  ;;  %215 = vst.msk [vmem:[%s732_s20] sm:$0xff] %vm214_vm0, %v693_v3  ;;  %v748_v5 = vld [vmem:[%s737_s23] sm:$0xff]  ;;  %v752_v6 = vld [vmem:[%s737_s23 + $0x8] sm:$0xff] }
  0x14   : > { %s232_s27 = scalar_select %p206_p5, 1, 0  ;;  %v755_v7 = vld [vmem:[%s742_s26] sm:$0xff]  ;;  %v279_v8 = vmul.f32 0.5, %v748_v5  ;;  %v759_v9 = vld [vmem:[%s742_s26 + $0x8] sm:$0xff]  ;;  %v278_v13 = vmul.f32 32.0, %v748_v5 }
  0x15   : > { %v240_v11 = vsub.f32 %v748_v5, %v755_v7  ;;  %v242_v12 = vsub.f32 %v752_v6, %v759_v9  ;;  %v286_v15 = vmul.f32 0.5, %v752_v6  ;;  %vm238_vm3 = vcmp.eq.f32.partialorder %v755_v7, 0.0 }
  0x16   : > { %v233_v10 = vstv %s232_s27  ;;  %v280_v14 = vmul.f32 224.0, %v279_v8  ;;  %v294_v18 = vmul.f32 0.5, %v755_v7  ;;  %v293_v29 = vmul.f32 32.0, %v755_v7 }
  0x17   : > { %vm234_vm2 = vcmp.eq.s32.totalorder %v233_v10, 1  ;;  %v241_v16 = vmul.f32 %v240_v11, %v240_v11  ;;  %v768_v17 = vmul.f32 %v242_v12, %v242_v12  ;;  %v287_v20 = vmul.f32 224.0, %v286_v15  ;;  %v219_v11 = vld [vmem:[%s737_s23 + $0x10] sm:$0xff] }
  0x18   : > { %v282_v19 = vrot.slane %v280_v14, 2  ;;  %vm771_vm4 = vmand %vm234_vm2, %vm231_vm1  ;;  %v295_v25 = vmul.f32 224.0, %v294_v18  ;;  %vm236_vm6 = vcmp.gt.f32.partialorder %v755_v7, 0.0  ;;  %v223_v12 = vld [vmem:[%s742_s26 + $0x10] sm:$0xff]  ;;  %v224_v14 = vld [vmem:[%s742_s26 + $0x18] sm:$0x3f] }
  0x19   : > { %v245_v22 = vrot.slane %v768_v17, 5  ;;  %vm778_vm5 = vmand %vm238_vm3, %vm771_vm4  ;;  %v289_v24 = vrot.slane %v287_v20, 2 }
  0x1a   : > { %v284_v27 = vsub.f32 %v278_v13, %v282_v19  ;;  %v285_v28 = vadd.f32 %v282_v19, %v278_v13  ;;  %v297_v33 = vrot.slane %v295_v25, 2  ;;  %vm791_vm7 = vmand %vm236_vm6, %vm771_vm4  ;;  %v249_v19 = vsub.f32 %v219_v11, %v223_v12 }
  0x1b   : > { %v782_v26 = vadd.f32 %v245_v22, %v241_v16  ;;  %v291_v30 = vsub.f32 %v278_v13, %v289_v24  ;;  %v292_v32 = vadd.f32 %v289_v24, %v278_v13  ;;  %v220_v13 = vld [vmem:[%s737_s23 + $0x18] sm:$0x3f] }
  0x1c   : > { %v309_v34 = vsub.f32 %v285_v28, %v284_v27  ;;  %v299_v35 = vsub.f32 %v293_v29, %v297_v33  ;;  %v300_v36 = vadd.f32 %v297_v33, %v293_v29  ;;  %v250_v22 = vsub.f32 %v220_v13, %v224_v14 }
  0x1d   : > { %v248_v31 = vsel %vm778_vm5, %v782_v26, 0.0  ;;  %v348_v38 = vsub.f32 %v292_v32, %v291_v30  ;;  %v251_v25 = vmul.f32 %v249_v19, %v249_v19  ;;  %v392_v13 = vrot.slane %v752_v6, 4 }
  0x1e   : > { %v311_v37 = vrot.slane %v309_v34, 1  ;;  %v301_v39 = vmax.f32 %v284_v27, %v299_v35  ;;  %v302_v40 = vmin.f32 %v285_v28, %v300_v36  ;;  %v314_v41 = vsub.f32 %v300_v36, %v299_v35 }
  0x1f   : > { %v331_v42 = vrot.slane %v299_v35, 3  ;;  %v336_v43 = vrot.slane %v300_v36, 3  ;;  %v350_v46 = vrot.slane %v348_v38, 1  ;;  %v257_v29 = vrot.slane %v251_v25, 2 }
  0x20   : > { %v303_v44 = vsub.f32 %v302_v40, %v301_v39  ;;  %v313_v45 = vmul.f32 %v311_v37, %v309_v34  ;;  %v316_v47 = vrot.slane %v314_v41, 1  ;;  %v381_v39 = vrot.slane %v748_v5, 2 }
  0x21   : > { %v333_v48 = vmax.f32 %v284_v27, %v331_v42  ;;  %v334_v49 = vmax.f32 %v291_v30, %v331_v42  ;;  %v338_v50 = vmin.f32 %v285_v28, %v336_v43  ;;  %v339_v52 = vmin.f32 %v292_v32, %v336_v43 }
  0x22   : > { %v304_v51 = vmax.f32 %v303_v44, 0.0  ;;  %v318_v53 = vmul.f32 %v316_v47, %v314_v41  ;;  %v352_v57 = vmul.f32 %v350_v46, %v309_v34  ;;  %v252_v27 = vmul.f32 %v250_v22, %v250_v22 }
  0x23   : > { %v340_v54 = vsub.f32 %v338_v50, %v333_v48  ;;  %v342_v56 = vsub.f32 %v339_v52, %v334_v49  ;;  %v256_v28 = vrot.slane %v768_v17, 2  ;;  %v383_v40 = vrot.slane %v748_v5, 5 }
  0x24   : > { %v306_v55 = vrot.slane %v304_v51, 1  ;;  %v319_v58 = vadd.f32 %v318_v53, %v313_v45  ;;  %v354_v59 = vrot.slane %v318_v53, 3  ;;  %v259_v30 = vrot.slane %v252_v27, 2 }
  0x25   : > { %v341_v61 = vmax.f32 %v340_v54, 0.0  ;;  %v343_v62 = vmax.f32 %v342_v56, 0.0  ;;  %v258_v33 = vsel %vm255_vm8, %v256_v28, %v257_v29  ;;  %v387_v17 = vrot.slane %v752_v6, 3 }
  0x26   : > { %v308_v60 = vmul.f32 %v306_v55, %v304_v51  ;;  %v356_v2 = vadd.f32 %v354_v59, %v352_v57  ;;  %v260_v35 = vsel %vm255_vm8, %v257_v29, %v259_v30  ;;  %v265_v38 = vsel %vm214_vm0, %v258_v33, 0.0 }
  0x27   : > { %v345_v1 = vrot.slane %v343_v62, 1  ;;  %v266_v41 = vsel %vm214_vm0, %v260_v35, 0.0  ;;  %v389_v43 = vrot.slane %v748_v5, 6  ;;  %v407_v44 = vrot.slane %v755_v7, 2 }
  0x28   : > { %v320_v63 = vsub.f32 %v319_v58, %v308_v60  ;;  %v409_v45 = vrot.slane %v755_v7, 5  ;;  %v413_v46 = vrot.slane %v759_v9, 3  ;;  %v415_v47 = vrot.slane %v755_v7, 6 }
  0x29   : > { %v347_v10 = vmul.f32 %v345_v1, %v341_v61  ;;  %v267_v50 = vadd.f32 %v266_v41, %v265_v38  ;;  %v269_v51 = vsel %vm268_vm9, %v259_v30, 0.0  ;;  %v376_v61 = vrot.slane %v748_v5, 1 }
  0x2a   : > { %v322_v8 = vrot.slane %v320_v63, 4  ;;  %v399_v62 = vrot.slane %v755_v7, 3  ;;  %v378_v1 = vrot.slane %v748_v5, 4 }
  0x2b   : > { %v357_v16 = vsub.f32 %v356_v2, %v347_v10  ;;  %v270_v56 = vadd.f32 %v269_v51, %v267_v50  ;;  %v402_v2 = vrot.slane %v755_v7, 1 }
  0x2c   : > { %v324_v15 = vsel %vm791_vm7, %v322_v8, 1.0  ;;  %v404_v8 = vrot.slane %v755_v7, 4 }
  0x2d   : > { %v326_v18 = vrot.slane %v324_v15, 4  ;;  %v359_v20 = vrot.slane %v357_v16, 1  ;;  %v394_v15 = vrot.slane %v748_v5, 7 }
  0x2f   : > { %657 = vrcp.f32 %v326_v18  ;;  %v361_v21 = vsel %vm791_vm7, %v359_v20, 1.0 }
  0x30   : > { %v363_v24 = vrot.slane %v361_v21, 7 }
  0x32   : > { %659 = vrcp.f32 %v363_v24 }
  0x39   : > { %v658_v32 = vpop.eup %657 }
  0x3a   : > { %v329_v34 = vmul.f32 %v658_v32, %v308_v60  ;;  %v373_v60 = vrot.slane %v748_v5, 3 }
  0x3c   : > { %v368_v36 = vrot.slane %v329_v34, 3  ;;  %v660_v37 = vpop.eup %659 }
  0x3d   : > { %v366_v42 = vmul.f32 %v660_v37, %v347_v10  ;;  %v271_v10 = vrot.slane %v270_v56, 4 }
  0x3f   : > { %vm814_vm10 = vcmp.gt.f32.partialorder %v366_v42, %v368_v36  ;;  %v272_v20 = vadd.f32 %v271_v10, %v270_v56 }
  0x40   : > { %v385_v49 = vsel %vm814_vm10, %v381_v39, %v383_v40  ;;  %v391_v52 = vsel %vm814_vm10, %v387_v17, %v389_v43  ;;  %v411_v53 = vsel %vm814_vm10, %v407_v44, %v409_v45  ;;  %v417_v9 = vsel %vm814_vm10, %v413_v46, %v415_v47 }
  0x41   : > { %v435_v54 = vrot.slane %v385_v49, 1  ;;  %v446_v55 = vrot.slane %v411_v53, 1  ;;  %v463_v58 = vrot.slane %v391_v52, 1  ;;  %v474_v59 = vrot.slane %v417_v9, 1 }
  0x42   : > { %v375_v14 = vsel %vm814_vm10, %v748_v5, %v373_v60  ;;  %v401_v16 = vsel %vm814_vm10, %v755_v7, %v399_v62  ;;  %v380_v18 = vsel %vm814_vm10, %v376_v61, %v378_v1  ;;  %v406_v19 = vsel %vm814_vm10, %v402_v2, %v404_v8 }
  0x43   : > { %v437_v57 = vsel %vm791_vm7, %v435_v54, 1.0  ;;  %v448_v63 = vsel %vm791_vm7, %v446_v55, 1.0  ;;  %v465_v11 = vsel %vm791_vm7, %v463_v58, 1.0  ;;  %v476_v12 = vsel %vm791_vm7, %v474_v59, 1.0 }
  0x44   : > { %661 = vrsqrt.f32 %v437_v57  ;;  %v429_v6 = vsub.f32 %v375_v14, %v401_v16  ;;  %v371_v22 = vsel %vm814_vm10, %v366_v42, %v368_v36  ;;  %v396_v21 = vsel %vm814_vm10, %v392_v13, %v394_v15 }
  0x45   : > { %663 = vrsqrt.f32 %v448_v63  ;;  %v431_v5 = vsub.f32 %v380_v18, %v406_v19  ;;  %vm440_vm11 = vcmp.eq.f32.partialorder %v437_v57, inf  ;;  %v443_v25 = vand.u32 2147483648, %v437_v57 }
  0x46   : > { %665 = vrsqrt.f32 %v465_v11  ;;  %v273_v7 = vrot.slane %v272_v20, 2  ;;  %v397_v27 = vsel %vm814_vm10, %v394_v15, %v392_v13  ;;  %vm442_vm12 = vcmp.eq.f32.partialorder %v437_v57, 0.0 }
  0x47   : > { %667 = vrsqrt.f32 %v476_v12  ;;  %v418_v30 = vsub.f32 %v396_v21, %v371_v22  ;;  %v430_v32 = vmul.f32 %v429_v6, %v429_v6  ;;  %vm451_vm13 = vcmp.eq.f32.partialorder %v448_v63, inf }
  0x48   : > { %v454_v33 = vand.u32 2147483648, %v448_v63  ;;  %v432_v34 = vmul.f32 %v431_v5, %v431_v5  ;;  %vm453_vm14 = vcmp.eq.f32.partialorder %v448_v63, 0.0  ;;  %vm468_vm15 = vcmp.eq.f32.partialorder %v465_v11, inf }
  0x49   : > { %vm470_vm1 = vcmp.eq.f32.partialorder %v465_v11, 0.0  ;;  %v471_v39 = vand.u32 2147483648, %v465_v11  ;;  %vm479_vm2 = vcmp.eq.f32.partialorder %v476_v12, inf  ;;  %v482_v17 = vand.u32 2147483648, %v476_v12 }
  0x4a   : > { %v419_v43 = vmul.f32 %v418_v30, %v418_v30  ;;  %vm481_vm3 = vcmp.eq.f32.partialorder %v476_v12, 0.0  ;;  %v274_v48 = vadd.f32 %v273_v7, %v272_v20  ;;  %v424_v49 = vmul.f32 %v397_v27, %v397_v27  ;;  %v539_v27 = vld [vmem:[%s732_s20] sm:$0xff] }
  0x4b   : > { %v433_v52 = vadd.f32 %v432_v34, %v430_v32  ;;  %v497_v54 = vshrl.u32 %v225_v0, 7  ;;  %v629_v19 = vsel %vm791_vm7, 1.0, %v693_v3 }
  0x4c   : > { %v421_v55 = vrot.slane %v419_v43, 1  ;;  %v275_v58 = vrot.slane %v274_v48, 1  ;;  %v426_v59 = vrot.slane %v424_v49, 1 }
  0x4d   : > { %v501_v62 = vsub.s32 4, %v497_v54  ;;  %vm504_vm4 = vcmp.eq.s32.totalorder %v497_v54, 1  ;;  %vm498_vm6 = vcmp.eq.s32.totalorder %v497_v54, 0  ;;  %vm511_vm8 = vcmp.eq.s32.totalorder %v497_v54, 2 }
  0x4e   : > { %v662_v24 = vpop.eup %661  ;;  %v276_v2 = vadd.f32 %v275_v58, %v274_v48  ;;  %v428_v8 = vsel %vm791_vm7, %v426_v59, 0.0  ;;  %vm518_vm9 = vcmp.eq.s32.totalorder %v497_v54, 3  ;;  %vm525_vm10 = vcmp.eq.s32.totalorder %v497_v54, 4 }
  0x4f   : > { %v439_v28 = vmul.f32 %v662_v24, %v437_v57  ;;  %v664_v29 = vpop.eup %663  ;;  %v515_v0 = vrot.slane %v428_v8, %v501_v62  ;;  %v522_v18 = vrot.slane %v248_v31, %v501_v62  ;;  %v536_v24 = vrot.slane %v629_v19, %v501_v62 }
  0x50   : > { %v450_v36 = vmul.f32 %v664_v29, %v448_v63  ;;  %v666_v37 = vpop.eup %665  ;;  %v277_v13 = vsel %vm791_vm7, %v276_v2, 0.0 }
  0x51   : > { %v441_v35 = vsel %vm440_vm11, %v437_v57, %v439_v28  ;;  %v668_v40 = vpop.eup %667  ;;  %v467_v42 = vmul.f32 %v666_v37, %v465_v11  ;;  %v516_v6 = vsel %vm511_vm8, %v515_v0, 0.0  ;;  %v529_v22 = vrot.slane %v277_v13, %v501_v62 }
  0x52   : > { %v444_v38 = vsel %vm442_vm12, %v443_v25, %v441_v35  ;;  %v452_v41 = vsel %vm451_vm13, %v448_v63, %v450_v36  ;;  %v478_v45 = vmul.f32 %v668_v40, %v476_v12  ;;  %v423_v63 = vsel %vm791_vm7, %v421_v55, 0.0 }
  0x53   : > { %v455_v44 = vsel %vm453_vm14, %v454_v33, %v452_v41  ;;  %v469_v47 = vsel %vm468_vm15, %v465_v11, %v467_v42  ;;  %v508_v11 = vrot.slane %v423_v63, %v501_v62  ;;  %v523_v5 = vsel %vm518_vm9, %v522_v18, 0.0 }
  0x54   : > { %v456_v46 = vsub.f32 %v444_v38, %v455_v44  ;;  %v472_v50 = vsel %vm470_vm1, %v471_v39, %v469_v47  ;;  %v480_v51 = vsel %vm479_vm2, %v476_v12, %v478_v45  ;;  %vm532_vm11 = vcmp.eq.s32.totalorder %v497_v54, 5 }
  0x55   : > { %v483_v9 = vsel %vm481_vm3, %v482_v17, %v480_v51  ;;  %v509_v16 = vsel %vm504_vm4, %v508_v11, 0.0  ;;  %v530_v23 = vsel %vm525_vm10, %v529_v22, 0.0  ;;  %v537_v26 = vsel %vm532_vm11, %v536_v24, 0.0 }
  0x56   : > { %v457_v53 = vmul.f32 %v456_v46, %v456_v46  ;;  %v484_v56 = vsub.f32 %v472_v50, %v483_v9 }
  0x58   : > { %v459_v57 = vrot.slane %v457_v53, 7  ;;  %v485_v60 = vmul.f32 %v484_v56, %v484_v56 }
  0x5a   : > { %v461_v61 = vadd.f32 %v459_v57, %v433_v52  ;;  %v487_v1 = vrot.slane %v485_v60, 7 }
  0x5c   : > { %v489_v10 = vadd.f32 %v487_v1, %v461_v61 }
  0x5e   : > { %v491_v12 = vrot.slane %v489_v10, 1 }
  0x60   : > { %v493_v14 = vsel %vm791_vm7, %v491_v12, 0.0 }
  0x61   : > { %v502_v15 = vrot.slane %v493_v14, %v501_v62 }
  0x63   : > { %v503_v20 = vsel %vm498_vm6, %v502_v15, 0.0 }
  0x64   : > { %v510_v21 = vadd.f32 %v509_v16, %v503_v20 }
  0x66   : > { %v517_v25 = vadd.f32 %v516_v6, %v510_v21 }
  0x68   : > { %v524_v7 = vadd.f32 %v523_v5, %v517_v25 }
  0x6a   : > { %v531_v31 = vadd.f32 %v530_v23, %v524_v7 }
  0x6c   : > { %v538_v28 = vadd.f32 %v537_v26, %v531_v31 }
  0x6e   : > { %v540_v4 = vadd.f32 %v539_v27, %v538_v28 }
  0x70   : > { %541 = vst.msk [vmem:[%s732_s20] sm:$0xff] %vm214_vm0, %v540_v4 }
  0x71 PF: > { %s12_s11 = sadd.s32 1, %s691_s11   ;;  %s897_s9 = smov %s687_s10 }
  0x72   : > { %p9_p6 = scmp.ge.s32.totalorder %s12_s11, 4   ;;  %s898_s10 = smov %s900_s12 }
  0x74   :  { %11 = sbr.rel (!%p9_p6) target bundleno = 2 (0x2), region = 65 }

</bundles_post_ra>
